<compile_context>
chip_gen: v7x
topology: tpu7x:2x2x1
jax: 0.10.0
libtpu: 0.0.40
codegen_flags: <defaults>
</compile_context>

<pallas_src>
import functools
import math

import jax
import jax.numpy as jnp
from jax.experimental import pallas as pl
from jax.experimental.pallas import tpu as pltpu


def _round_up(x: int, m: int) -> int:
    return ((x + m - 1) // m) * m


def _make_neumf_kernel(num_hidden_layers: int):
    """NeuMF forward body for a fixed number of MLP hidden layers (>= 1).

    Ref order: p, q, uv, (W_i, b_i) * num_hidden_layers, wpg_row, wpm_row, out
    """

    def kernel(*refs):
        p_ref, q_ref, uv_ref = refs[0], refs[1], refs[2]
        idx = 3
        layers = []
        for _ in range(num_hidden_layers):
            layers.append((refs[idx], refs[idx + 1]))
            idx += 2
        wpg_ref, wpm_ref = refs[idx], refs[idx + 1]
        out_ref = refs[idx + 2]

        # ---- GMF branch: upcast bf16 embeddings to f32 before the
        # elementwise product (v5e has no bf16 VPU path; exact everywhere).
        gmf = p_ref[...].astype(jnp.float32) * q_ref[...].astype(jnp.float32)

        # ---- MLP branch: first layer is one bf16 x bf16 MXU dot on the
        # pre-concatenated [u, v] tile with f32 accumulation (bit-exact vs
        # the f32 reference up to accumulation order).
        w1_ref, b1_ref = layers[0]
        h = jnp.dot(uv_ref[...], w1_ref[...], preferred_element_type=jnp.float32)
        h = jnp.maximum(h + b1_ref[...], 0.0)

        # Remaining layers: activations stay f32; bf16 weights (already DMA'd
        # as half the bytes) are upcast on use.
        for w_ref, b_ref in layers[1:]:
            h = jnp.dot(h, w_ref[...].astype(jnp.float32),
                        preferred_element_type=jnp.float32)
            h = jnp.maximum(h + b_ref[...], 0.0)

        # ---- Prediction layer (output width 1): VPU multiply + lane
        # reduction instead of two N=1 MXU matmuls. Padded lanes of h hit
        # zero weights, so the padding is exact.
        logit = (
            jnp.sum(gmf * wpg_ref[...], axis=-1)
            + jnp.sum(h * wpm_ref[...], axis=-1)
        ).reshape(1, -1)                                   # (1, TB) lane-dense

        # Sigmoid: divide goes to the (otherwise idle) EUP slot.
        out_ref[...] = pl.reciprocal(1.0 + jnp.exp(-logit), approx=True)

    return kernel


def init_neumf_params(key, num_factors, num_users, num_items, nums_hiddens):
    """Synthetic params matching the torch module's shapes.

    Embedding tables and linear weights are stored in bfloat16 (halves HBM
    traffic); biases and the prediction weight stay float32.
    """
    keys = jax.random.split(key, 6 + 2 * len(nums_hiddens))
    k = iter(keys)
    params = {
        "P": (jax.random.normal(next(k), (num_users, num_factors), jnp.float32) * 0.1).astype(jnp.bfloat16),
        "Q": (jax.random.normal(next(k), (num_items, num_factors), jnp.float32) * 0.1).astype(jnp.bfloat16),
        "U": (jax.random.normal(next(k), (num_users, num_factors), jnp.float32) * 0.1).astype(jnp.bfloat16),
        "V": (jax.random.normal(next(k), (num_items, num_factors), jnp.float32) * 0.1).astype(jnp.bfloat16),
    }
    linear = []
    in_dim = num_factors * 2
    for h in nums_hiddens:
        w = (jax.random.normal(next(k), (in_dim, h), jnp.float32)
             * (1.0 / math.sqrt(in_dim))).astype(jnp.bfloat16)
        b = jax.random.normal(next(k), (1, h), jnp.float32) * 0.01
        linear.append((w, b))
        in_dim = h
    params["linear"] = linear
    pred_in = num_factors + (nums_hiddens[-1] if nums_hiddens else 0)
    params["W_pred"] = (jax.random.normal(next(k), (pred_in, 1), jnp.float32)
                        * (1.0 / math.sqrt(pred_in)))
    return params


@functools.partial(jax.jit, static_argnames=("num_factors", "nums_hiddens", "batch_tile"))
def neumf_forward(user_id, item_id, params, *, num_factors, nums_hiddens, batch_tile=512):
    assert len(nums_hiddens) >= 1
    F = num_factors
    B = user_id.shape[0]

    # Batch tiling: sublane-aligned tile, sized well under the v7x 64 MiB VMEM.
    TB = min(batch_tile, _round_up(B, 8))
    B_pad = _round_up(B, TB)
    num_tiles = B_pad // TB
    if B_pad != B:
        pad = B_pad - B
        user_id = jnp.pad(user_id, (0, pad))
        item_id = jnp.pad(item_id, (0, pad))

    # Glue: bf16 embedding-row gathers in XLA; MLP inputs pre-concatenated so
    # the kernel does one K=2F dot.
    # TODO(synk): fuse these gathers into the kernel (PrefetchScalarGridSpec
    # with num_scalar_prefetch=2 + manual row DMAs from HBM tables).
    p = params["P"][user_id]                                        # [B_pad, F]  bf16
    q = params["Q"][item_id]                                        # [B_pad, F]  bf16
    uv = jnp.concatenate([params["U"][user_id],
                          params["V"][item_id]], axis=1)            # [B_pad, 2F] bf16

    # Zero-pad hidden widths to multiples of 128 lanes (exact math).
    padded_layers = []
    prev_pad = 0
    for (w, b) in params["linear"]:
        h_dim = w.shape[1]
        h_pad = _round_up(h_dim, 128) - h_dim
        w_p = jnp.pad(w, ((0, prev_pad), (0, h_pad)))
        b_p = jnp.pad(b, ((0, 0), (0, h_pad)))
        padded_layers.append((w_p, b_p))
        prev_pad = h_pad

    # Prediction weight split into two row vectors (concat-free epilogue).
    wp = params["W_pred"]                                           # [F + H_last, 1] f32
    wpg_row = wp[:F, 0].reshape(1, F)
    wpm_row = jnp.pad(wp[F:, 0].reshape(1, -1), ((0, 0), (0, prev_pad)))

    kernel_inputs = [p, q, uv]
    in_specs = [
        pl.BlockSpec((TB, F), lambda i: (i, 0)),
        pl.BlockSpec((TB, F), lambda i: (i, 0)),
        pl.BlockSpec((TB, 2 * F), lambda i: (i, 0)),
    ]
    for w_p, b_p in padded_layers:
        kernel_inputs += [w_p, b_p]
        in_specs += [
            pl.BlockSpec(w_p.shape, lambda i: (0, 0)),   # weights stay resident
            pl.BlockSpec(b_p.shape, lambda i: (0, 0)),
        ]
    kernel_inputs += [wpg_row, wpm_row]
    in_specs += [
        pl.BlockSpec(wpg_row.shape, lambda i: (0, 0)),
        pl.BlockSpec(wpm_row.shape, lambda i: (0, 0)),
    ]

    kernel = _make_neumf_kernel(len(nums_hiddens))

    out_flat = pl.pallas_call(
        kernel,
        out_shape=jax.ShapeDtypeStruct((1, B_pad), jnp.float32),    # lane-dense slab
        grid_spec=pltpu.PrefetchScalarGridSpec(
            num_scalar_prefetch=0,
            grid=(num_tiles,),
            in_specs=in_specs,
            out_specs=pl.BlockSpec((1, TB), lambda i: (0, i)),
        ),
        compiler_params=pltpu.CompilerParams(
            dimension_semantics=("parallel",),            # megacore-shard on v7x
            vmem_limit_bytes=32 * 1024 * 1024,            # safe for v7x's 64 MiB VMEM
        ),
    )(*kernel_inputs)

    return out_flat[0, :B].reshape(B, 1)


def neumf_reference(user_id, item_id, params):
    """Pure-JAX f32 reference mirroring the torch forward (params upcast from storage)."""
    p = params["P"][user_id].astype(jnp.float32)
    q = params["Q"][item_id].astype(jnp.float32)
    u = params["U"][user_id].astype(jnp.float32)
    v = params["V"][item_id].astype(jnp.float32)
    gmf = p * q
    x = jnp.concatenate([u, v], axis=1)
    for w, b in params["linear"]:
        x = jnp.maximum(x @ w.astype(jnp.float32) + b, 0.0)
    z = jnp.concatenate([gmf, x], axis=1)
    return jax.nn.sigmoid(z @ params["W_pred"])


if __name__ == "__main__":
    num_factors = 16
    num_users = 32
    num_items = 48
    nums_hiddens = (32, 16)
    batch = 8

    key = jax.random.PRNGKey(0)
    pkey, ukey, ikey = jax.random.split(key, 3)
    params = init_neumf_params(pkey, num_factors, num_users, num_items, nums_hiddens)

    user_id = jax.random.randint(ukey, (batch,), 0, num_users, dtype=jnp.int32)
    item_id = jax.random.randint(ikey, (batch,), 0, num_items, dtype=jnp.int32)

    out = neumf_forward(
        user_id, item_id, params,
        num_factors=num_factors, nums_hiddens=nums_hiddens,
    )
    out = jax.block_until_ready(out)

    ref = neumf_reference(user_id, item_id, params)
    assert out.shape == (batch, 1)
    # Tolerance covers the approximate (EUP) reciprocal in the sigmoid; all other
    # arithmetic matches the f32 reference exactly up to accumulation order.
    assert jnp.allclose(out, ref, atol=2e-3, rtol=2e-3), (out, ref)

    print("KERNEL_OK")
</pallas_src>

<mosaic_0001>
module attributes {stable_mosaic.version = 11 : i64} {
  func.func @kernel(%arg0: i32, %arg1: memref<8x16xbf16, #tpu.memory_space<vmem>>, %arg2: memref<8x16xbf16, #tpu.memory_space<vmem>>, %arg3: memref<8x32xbf16, #tpu.memory_space<vmem>>, %arg4: memref<32x128xbf16, #tpu.memory_space<vmem>>, %arg5: memref<1x128xf32, #tpu.memory_space<vmem>>, %arg6: memref<128x128xbf16, #tpu.memory_space<vmem>>, %arg7: memref<1x128xf32, #tpu.memory_space<vmem>>, %arg8: memref<1x16xf32, #tpu.memory_space<vmem>>, %arg9: memref<1x128xf32, #tpu.memory_space<vmem>>, %arg10: memref<1x8xf32, #tpu.memory_space<vmem>>) attributes {dimension_semantics = [#tpu.dimension_semantics<parallel>], iteration_bounds = array<i64: 1>, scalar_prefetch = 0 : i64, scratch_operands = 0 : i64, tpu.core_type = #tpu.core_type<tc>, window_params = [{transform_indices = @transform_0, window_bounds = array<i64: 8, 16>}, {transform_indices = @transform_1, window_bounds = array<i64: 8, 16>}, {transform_indices = @transform_2, window_bounds = array<i64: 8, 32>}, {pipeline_mode = #tpu.pipeline_mode<synchronous>, transform_indices = @transform_3, window_bounds = array<i64: 32, 128>}, {pipeline_mode = #tpu.pipeline_mode<synchronous>, transform_indices = @transform_4, window_bounds = array<i64: 1, 128>}, {pipeline_mode = #tpu.pipeline_mode<synchronous>, transform_indices = @transform_5, window_bounds = array<i64: 128, 128>}, {pipeline_mode = #tpu.pipeline_mode<synchronous>, transform_indices = @transform_6, window_bounds = array<i64: 1, 128>}, {pipeline_mode = #tpu.pipeline_mode<synchronous>, transform_indices = @transform_7, window_bounds = array<i64: 1, 16>}, {pipeline_mode = #tpu.pipeline_mode<synchronous>, transform_indices = @transform_8, window_bounds = array<i64: 1, 128>}, {transform_indices = @transform_9, window_bounds = array<i64: 1, 8>}]} {
    %c0 = arith.constant 0 : index
    %c0_0 = arith.constant 0 : index
    %0 = vector.load %arg1[%c0, %c0_0] : memref<8x16xbf16, #tpu.memory_space<vmem>>, vector<8x16xbf16>
    %1 = arith.extf %0 : vector<8x16xbf16> to vector<8x16xf32>
    %c0_1 = arith.constant 0 : index
    %c0_2 = arith.constant 0 : index
    %2 = vector.load %arg2[%c0_1, %c0_2] : memref<8x16xbf16, #tpu.memory_space<vmem>>, vector<8x16xbf16>
    %3 = arith.extf %2 : vector<8x16xbf16> to vector<8x16xf32>
    %4 = arith.mulf %1, %3 : vector<8x16xf32>
    %c0_3 = arith.constant 0 : index
    %c0_4 = arith.constant 0 : index
    %5 = vector.load %arg3[%c0_3, %c0_4] : memref<8x32xbf16, #tpu.memory_space<vmem>>, vector<8x32xbf16>
    %c0_5 = arith.constant 0 : index
    %c0_6 = arith.constant 0 : index
    %6 = vector.load %arg4[%c0_5, %c0_6] : memref<32x128xbf16, #tpu.memory_space<vmem>>, vector<32x128xbf16>
    %cst = arith.constant dense<0.000000e+00> : vector<8x128xf32>
    %7 = tpu.matmul %5, %6, %cst {dimension_numbers = #tpu.dot_dimension_numbers<[1], [0], [0], [1], [0, 0, 1, 1], [], []>} : vector<8x32xbf16>, vector<32x128xbf16>, vector<8x128xf32> -> vector<8x128xf32>
    %c0_7 = arith.constant 0 : index
    %c0_8 = arith.constant 0 : index
    %8 = vector.load %arg5[%c0_7, %c0_8] : memref<1x128xf32, #tpu.memory_space<vmem>>, vector<1x128xf32>
    %9 = vector.broadcast %8 : vector<1x128xf32> to vector<8x128xf32>
    %10 = arith.addf %7, %9 : vector<8x128xf32>
    %cst_9 = arith.constant 0.000000e+00 : f32
    %11 = vector.broadcast %cst_9 : f32 to vector<8x128xf32>
    %12 = arith.maximumf %10, %11 : vector<8x128xf32>
    %c0_10 = arith.constant 0 : index
    %c0_11 = arith.constant 0 : index
    %13 = vector.load %arg6[%c0_10, %c0_11] : memref<128x128xbf16, #tpu.memory_space<vmem>>, vector<128x128xbf16>
    %14 = arith.extf %13 : vector<128x128xbf16> to vector<128x128xf32>
    %cst_12 = arith.constant dense<0.000000e+00> : vector<8x128xf32>
    %15 = tpu.matmul %12, %14, %cst_12 {dimension_numbers = #tpu.dot_dimension_numbers<[1], [0], [0], [1], [0, 0, 1, 1], [], []>} : vector<8x128xf32>, vector<128x128xf32>, vector<8x128xf32> -> vector<8x128xf32>
    %c0_13 = arith.constant 0 : index
    %c0_14 = arith.constant 0 : index
    %16 = vector.load %arg7[%c0_13, %c0_14] : memref<1x128xf32, #tpu.memory_space<vmem>>, vector<1x128xf32>
    %17 = vector.broadcast %16 : vector<1x128xf32> to vector<8x128xf32>
    %18 = arith.addf %15, %17 : vector<8x128xf32>
    %cst_15 = arith.constant 0.000000e+00 : f32
    %19 = vector.broadcast %cst_15 : f32 to vector<8x128xf32>
    %20 = arith.maximumf %18, %19 : vector<8x128xf32>
    %c0_16 = arith.constant 0 : index
    %c0_17 = arith.constant 0 : index
    %21 = vector.load %arg8[%c0_16, %c0_17] : memref<1x16xf32, #tpu.memory_space<vmem>>, vector<1x16xf32>
    %22 = vector.broadcast %21 : vector<1x16xf32> to vector<8x16xf32>
    %23 = arith.mulf %4, %22 : vector<8x16xf32>
    %cst_18 = arith.constant dense<0.000000e+00> : vector<8xf32>
    %24 = vector.multi_reduction <add>, %23, %cst_18 [1] : vector<8x16xf32> to vector<8xf32>
    %c0_19 = arith.constant 0 : index
    %c0_20 = arith.constant 0 : index
    %25 = vector.load %arg9[%c0_19, %c0_20] : memref<1x128xf32, #tpu.memory_space<vmem>>, vector<1x128xf32>
    %26 = vector.broadcast %25 : vector<1x128xf32> to vector<8x128xf32>
    %27 = arith.mulf %20, %26 : vector<8x128xf32>
    %cst_21 = arith.constant dense<0.000000e+00> : vector<8xf32>
    %28 = vector.multi_reduction <add>, %27, %cst_21 [1] : vector<8x128xf32> to vector<8xf32>
    %29 = arith.addf %24, %28 : vector<8xf32>
    %30 = vector.shape_cast %29 : vector<8xf32> to vector<1x8xf32>
    %cst_22 = arith.constant 0.000000e+00 : f32
    %31 = vector.broadcast %cst_22 : f32 to vector<1x8xf32>
    %32 = arith.subf %31, %30 : vector<1x8xf32>
    %33 = math.exp %32 : vector<1x8xf32>
    %cst_23 = arith.constant 1.000000e+00 : f32
    %34 = vector.broadcast %cst_23 : f32 to vector<1x8xf32>
    %35 = arith.addf %34, %33 : vector<1x8xf32>
    %36 = tpu.reciprocal %35 {approx = true} : vector<1x8xf32> -> vector<1x8xf32>
    %c0_24 = arith.constant 0 : index
    %c0_25 = arith.constant 0 : index
    %37 = vector.load %arg10[%c0_24, %c0_25] : memref<1x8xf32, #tpu.memory_space<vmem>>, vector<1x8xf32>
    tpu.vector_store %arg10[%c0_24, %c0_25], %36 {strides = array<i32>} : memref<1x8xf32, #tpu.memory_space<vmem>>, vector<1x8xf32>,
    return
  }
  func.func @transform_0(%arg0: i32) -> (i32, i32) {
    %c0_i32 = arith.constant 0 : i32
    %c0_i32_0 = arith.constant 0 : i32
    return %arg0, %c0_i32 : i32, i32
  }
  func.func @transform_1(%arg0: i32) -> (i32, i32) {
    %c0_i32 = arith.constant 0 : i32
    %c0_i32_0 = arith.constant 0 : i32
    return %arg0, %c0_i32 : i32, i32
  }
  func.func @transform_2(%arg0: i32) -> (i32, i32) {
    %c0_i32 = arith.constant 0 : i32
    %c0_i32_0 = arith.constant 0 : i32
    return %arg0, %c0_i32 : i32, i32
  }
  func.func @transform_3(%arg0: i32) -> (i32, i32) {
    %c0_i32 = arith.constant 0 : i32
    %c0_i32_0 = arith.constant 0 : i32
    %c0_i32_1 = arith.constant 0 : i32
    return %c0_i32, %c0_i32_0 : i32, i32
  }
  func.func @transform_4(%arg0: i32) -> (i32, i32) {
    %c0_i32 = arith.constant 0 : i32
    %c0_i32_0 = arith.constant 0 : i32
    %c0_i32_1 = arith.constant 0 : i32
    return %c0_i32, %c0_i32_0 : i32, i32
  }
  func.func @transform_5(%arg0: i32) -> (i32, i32) {
    %c0_i32 = arith.constant 0 : i32
    %c0_i32_0 = arith.constant 0 : i32
    %c0_i32_1 = arith.constant 0 : i32
    return %c0_i32, %c0_i32_0 : i32, i32
  }
  func.func @transform_6(%arg0: i32) -> (i32, i32) {
    %c0_i32 = arith.constant 0 : i32
    %c0_i32_0 = arith.constant 0 : i32
    %c0_i32_1 = arith.constant 0 : i32
    return %c0_i32, %c0_i32_0 : i32, i32
  }
  func.func @transform_7(%arg0: i32) -> (i32, i32) {
    %c0_i32 = arith.constant 0 : i32
    %c0_i32_0 = arith.constant 0 : i32
    %c0_i32_1 = arith.constant 0 : i32
    return %c0_i32, %c0_i32_0 : i32, i32
  }
  func.func @transform_8(%arg0: i32) -> (i32, i32) {
    %c0_i32 = arith.constant 0 : i32
    %c0_i32_0 = arith.constant 0 : i32
    %c0_i32_1 = arith.constant 0 : i32
    return %c0_i32, %c0_i32_0 : i32, i32
  }
  func.func @transform_9(%arg0: i32) -> (i32, i32) {
    %c0_i32 = arith.constant 0 : i32
    %c0_i32_0 = arith.constant 0 : i32
    return %c0_i32, %arg0 : i32, i32
  }
}

</mosaic_0001>

<bundles_post_ra>
// kernel: neumf_forward.1
= control target key start
LH: loop header
LB: loop body
LE: loop exit
PB: predicated region body
PF: predicated region fallthrough
CT: control target
= control target key end

     0   :  { %v437_v1 = vmov 0.0   ;;  %vm438_vm0 = vmmov 0   ;;  %v439_v4 = vmov 0.0|0.0   ;;  %s554_s0 = inlined_call_operand.vmem [shape: bf16[8,16], index: 0, kind: input, shape index: {}]   ;;  %s555_s1 = inlined_call_operand.vmem [shape: bf16[8,16], index: 1, kind: input, shape index: {}]   ;;  %s556_s2 = inlined_call_operand.vmem [shape: bf16[8,32], index: 2, kind: input, shape index: {}]   ;;  %s557_s3 = inlined_call_operand.vmem [shape: bf16[32,128], index: 3, kind: input, shape index: {}]   ;;  %s558_s4 = inlined_call_operand.vmem [shape: f32[1,128], index: 4, kind: input, shape index: {}]   ;;  %s559_s5 = inlined_call_operand.vmem [shape: bf16[128,128], index: 5, kind: input, shape index: {}]   ;;  %s560_s6 = inlined_call_operand.vmem [shape: f32[1,128], index: 6, kind: input, shape index: {}]   ;;  %s561_s7 = inlined_call_operand.vmem [shape: f32[1,16], index: 7, kind: input, shape index: {}]   ;;  %s562_s8 = inlined_call_operand.vmem [shape: f32[1,128], index: 8, kind: input, shape index: {}]   ;;  %s563_s9 = inlined_call_operand.hbm [shape: f32[1,8], index: 9, kind: output, shape index: {}]  }
   0x1   :  { %v407_v0 = vld [vmem:[%s557_s3] sm:$0xff]   ;;  %336 = vmatprep.subr.bf16.mxu0 %v437_v1  ;;  %v408_v2 = vld [vmem:[%s557_s3 + $0x8] sm:$0xff]   ;;  %340 = vmatprep.mubr.msk.bf16.mxu0 %vm438_vm0, %v437_v1 }
   0x2   :  { %337 = vmatpush3.bf16.msra.mxu0 %v407_v0  ;;  %v278_v3 = vld [vmem:[%s559_s5] sm:$0xff]   ;;  %379 = vmatprep.subr.bf16.mxu1 %v439_v4  ;;  %v309_v5 = vld [vmem:[%s559_s5 + $0x8] sm:$0xff]  }
   0x3   :  { %338 = vmatprep.subr.bf16.mxu0 %v437_v1  ;;  %381 = vmatpush3.bf16.msra.mxu1 %v278_v3 }
   0x4   :  { %376 = vmatprep.mubr.msk.f32.mxu1 %vm438_vm0, %v437_v1  ;;  %382 = vmatprep.subr.bf16.mxu1 %v439_v4 }
   0x5   :  { %14 = vsyncpa [#allocation3], 0  ;;  %v39_v6 = vld [vmem:[%s556_s2] sm:$0xf]  ;;  %vm63_vm1 = vcmask 261120   ;;  %v310_v7 = vld [vmem:[%s559_s5 + $0x10] sm:$0xff]   ;;  %v247_v42 = vlaneseq }
   0x6   :  { %339 = vmatpush3.bf16.msra.mxu0 %v408_v2  ;;  %v311_v8 = vld [vmem:[%s559_s5 + $0x18] sm:$0xff]   ;;  %v312_v9 = vld [vmem:[%s559_s5 + $0x20] sm:$0xff]   ;;  %v313_v10 = vld [vmem:[%s559_s5 + $0x28] sm:$0xff]   ;;  %vm226_vm2 = vcmask 130048   ;;  %vm254_vm3 = vcmask 57344  }
   0x7   :  { %384 = vmatpush3.bf16.msra.mxu1 %v309_v5  ;;  %v314_v11 = vld [vmem:[%s559_s5 + $0x30] sm:$0xff]   ;;  %v315_v12 = vld [vmem:[%s559_s5 + $0x38] sm:$0xff]   ;;  %v270_v13 = vld [vmem:[%s558_s4] ss:$0 sm:$0xff]  ;;  %v248_v43 = vand.u32 127, %v247_v42  ;;  %v250_v44 = vshrl.u32 %v247_v42, 7 }
   0x8   :  { %385 = vmatprep.subr.bf16.mxu1 %v439_v4  ;;  %v34_v20 = vld [vmem:[%s554_s0] sm:$0xf] }
   0x9   :  { %341 = vmatmul.mubr.msk.bf16.vlgmr.msra.gmra.mrb[0].mxu0 %vm63_vm1, %v39_v6  ;;  %v36_v21 = vld [vmem:[%s555_s1] sm:$0xf]  ;;  %v35_v22 = vunpack.c.l.bf16 %v34_v20  ;;  %v251_v45 = vsub.s32 %v248_v43, %v250_v44 }
   0xa   :  { %v37_v23 = vunpack.c.l.bf16 %v36_v21  ;;  %v275_v25 = vld [vmem:[%s561_s7] ss:$0 sm:$0xff] }
   0xb   :  { %387 = vmatpush3.bf16.msra.mxu1 %v310_v7  ;;  %v274_v28 = vld [vmem:[%s560_s6] ss:$0 sm:$0xff]  ;;  %s440_s6 = smov [#allocation2]  }
   0xc   :  { %388 = vmatprep.subr.bf16.mxu1 %v439_v4  ;;  %v38_v24 = vmul.f32 %v37_v23, %v35_v22  ;;  %v276_v32 = vld [vmem:[%s562_s8] ss:$0 sm:$0xff]  ;;  %s262_s7 = sshll.u32 %s440_s6, 4  ;;  %s263_s7 = int_to_ptr.vmem [resolvable:$true] %s262_s7 }
   0xd   :  { %s413_s8 = scalar_lea.vmem %s263_s7, 16  ;;  %s417_s16 = scalar_lea.vmem %s263_s7, 32 }
   0xe   :  { %v225_v26 = vmul.f32 %v275_v25, %v38_v24  ;;  %p414_p0 = scmp.ne.s32.totalorder %s263_s7, %s413_s8  ;;  %p418_p1 = scmp.lt.s32.totalorder %s263_s7, %s263_s7 }
   0xf   :  { %390 = vmatpush3.bf16.msra.mxu1 %v311_v8  ;;  %p419_p2 = scmp.lt.s32.totalorder %s417_s16, %s413_s8 }
  0x10   :  { %391 = vmatprep.subr.bf16.mxu1 %v439_v4  ;;  %v227_v27 = vsel %vm226_vm2, %v225_v26, 0.0 }
  0x11   :  { %228 = vadd.xlane.f32.xlu0 %v227_v27  ;;  %p420_p3 = por %p419_p2, %p418_p1 }
  0x13   :  { %393 = vmatpush3.bf16.msra.mxu1 %v312_v9  ;;  %p421_p4 = pnand %p420_p3, %p414_p0 }
  0x14   :  { %394 = vmatprep.subr.bf16.mxu1 %v439_v4 }
  0x17   :  { %396 = vmatpush3.bf16.msra.mxu1 %v313_v10 }
  0x18   :  { %397 = vmatprep.subr.bf16.mxu1 %v439_v4 }
  0x1b   :  { %399 = vmatpush3.bf16.msra.mxu1 %v314_v11 }
  0x1c   :  { %400 = vmatprep.subr.bf16.mxu1 %v439_v4 }
  0x1f   :  { %402 = vmatpush3.bf16.msra.mxu1 %v315_v12 }
  0x9e   :  { %v229_v35 = vpop.xlane.xlu0 %228 }
  0xdc   :  { %v101_v14 = vpop.f32.mrb[0].mxu0 }
  0xdd   :  { %v102_v15 = vadd.f32 %v270_v13, %v101_v14  ;;  %v342_v16 = vpop.f32.mrb[1].mxu0 }
  0xde   :  { %v104_v17 = vpop.f32.mrb[2].mxu0 }
  0xdf   :  { %v107_v18 = vmax.f32 %v102_v15, 0.0  ;;  %v343_v19 = vpop.f32.mrb[3].mxu0 }
  0xe1   :  { %377 = vmatmul.mubr.f32.vlgmr.msra.gmra.mrb[0].mxu1 %v107_v18 }
 0x1b4   :  { %v213_v29 = vpop.f32.mrb[0].mxu1 }
 0x1b5   :  { %v214_v30 = vadd.f32 %v274_v28, %v213_v29  ;;  %v378_v31 = vpop.f32.mrb[1].mxu1 }
 0x1b7   :  { %v217_v33 = vmax.f32 %v214_v30, 0.0 }
 0x1b9   :  { %v237_v34 = vmul.f32 %v276_v32, %v217_v33 }
 0x1bb   :  { %238 = vadd.xlane.f32.xlu0 %v237_v34 }
 0x248   :  { %v239_v36 = vpop.xlane.xlu0 %238 }
 0x249   :  { %v240_v37 = vadd.f32 %v239_v36, %v229_v35 }
 0x24b   :  { %v241_v38 = vsub.f32 0.0, %v240_v37 }
 0x24d   :  { %v242_v39 = vmul.f32 1.442695, %v241_v38 }
 0x24f   :  { %409 = vpow2.f32 %v242_v39 }
 0x259   :  { %v410_v40 = vpop.eup %409 }
 0x25a   :  { %v244_v41 = vadd.f32 1.0, %v410_v40 }
 0x25c   :  { %411 = vrcp.f32 %v244_v41 }
 0x266   :  { %v412_v46 = vpop.eup %411 }
 0x267   :  { %v252_v47 = vrot.slane %v412_v46, %v251_v45 }
 0x269   :  { %255 = vst.msk [vmem:[#allocation2] sm:$0x1] %vm254_vm3, %v252_v47 }
 0x26a   :  { %424 = shalt.err (!%p421_p4)
}
 0x26b   :  { %s425_s18 = scalar_lea.hbm %s563_s9, 16 }
 0x26c   :  { %p426_p5 = scmp.ne.s32.totalorder %s563_s9, %s425_s18  ;;  %p429_p6 = scmp.lt.u32.totalorder %s425_s18, %s563_s9 }
 0x26e   :  { %p431_p7 = pnand %p429_p6, %p426_p5 }
 0x270   :  { %434 = shalt.err (!%p431_p7)
}
 0x271   :  { %265 = dma.vmem_to_hbm [thread:$0]  %s263_s7, 16, %s563_s9, [#allocation3]  }
 0x272   :  { %435 = dma.done.wait [#allocation3], 16  }
 0x273   :  { %436 = vsyncadd [#allocation3], 4294967280 }
 0x274   :  { %269 = vsyncpa [#allocation3], 1 }

</bundles_post_ra>
